<compile_context>
chip_gen: v5e
topology: v5e:2x2
jax: 0.10.0
libtpu: 0.0.40
codegen_flags: <defaults>
</compile_context>

<pallas_src>
import numpy as np
import jax
import jax.numpy as jnp
from jax.experimental import pallas as pl
from jax.experimental.pallas import tpu as pltpu


def _make_bd_loss_kernel(C, R, tile_rows, tiles_per_split, needs_mask):
    assert C >= 2, "BDLoss needs at least one foreground channel"

    def kernel(net_ref, bound_ref, out_ref):
        # net_ref / bound_ref: (1, C, tile_rows, 128); out_ref: (1, 1, tile_rows, 128)
        s = pl.program_id(0)
        t = pl.program_id(2)

        # Pass 1: channel-wise max (VPU only; re-reading net_ref is a cheap vld).
        m = net_ref[0, 0, :, :].astype(jnp.float32)
        for c in range(1, C):
            m = jnp.maximum(m, net_ref[0, c, :, :].astype(jnp.float32))

        # Pass 2: softmax denominator + foreground numerator, no per-channel lists.
        denom = jnp.exp(net_ref[0, 0, :, :].astype(jnp.float32) - m)
        num = jnp.zeros_like(m)
        for c in range(1, C):
            e = jnp.exp(net_ref[0, c, :, :].astype(jnp.float32) - m)
            denom = denom + e
            num = num + e * bound_ref[0, c, :, :].astype(jnp.float32)

        term = num * pl.reciprocal(denom, approx=False)  # exact; within test tol

        if needs_mask:
            # Zero rows past the real extent R (partial last tile, or duplicated
            # clamped tiles from the split axis).  Garbage rows may be NaN/Inf;
            # jnp.where drops them regardless.
            t_global = s * tiles_per_split + t
            row = jax.lax.broadcasted_iota(jnp.int32, (tile_rows, 128), 0)
            term = jnp.where(t_global * tile_rows + row < R, term, 0.0)

        # Per-(split, batch) accumulator, resident across the spatial-tile axis.
        @pl.when(t == 0)
        def _():
            out_ref[...] = jnp.zeros_like(out_ref)

        out_ref[...] = out_ref[...] + term[None, None, :, :]

    return kernel


def _generation_params():
    """(target_step_bytes, vmem_limit_bytes), sized per TPU generation."""
    try:
        vmem_cap = int(pltpu.get_tpu_info().vmem_capacity_bytes)
    except Exception:
        vmem_cap = 64 * 1024 * 1024          # conservative: assume v7x VMEM
    if vmem_cap >= 100 * 1024 * 1024:        # v5e / v6e: 128 MiB physical VMEM
        return 16 * 1024 * 1024, 64 * 1024 * 1024
    return 8 * 1024 * 1024, 40 * 1024 * 1024  # v7x: 64 MiB physical VMEM


def _pick_tile_rows(R, bytes_per_row, target_step_bytes):
    """Rows of 128 lanes per grid step (multiple of 8, <= R when R >= 8),
    targeting ~target_step_bytes of HBM traffic per step."""
    if R < 8:
        return R                              # full-extent block (== array dim)
    rows = int(target_step_bytes // max(bytes_per_row, 1))
    rows = max(8, min(rows, R))
    return (rows // 8) * 8


def bd_loss(net_output, target, bound, *, tile_rows=None):
    """Pallas implementation of BDLoss.forward.

    net_output: (B, C, X, Y, Z)   raw logits
    target:     (B, 1, X, Y, Z)   unused (matches the PyTorch module)
    bound:      (B, C, X, Y, Z)   precomputed distance map
    returns scalar float32 loss = mean(softmax(net)[:, 1:] * bound[:, 1:])
    """
    del target  # unused by the reference forward pass
    B, C = net_output.shape[:2]
    spatial = net_output.shape[2:]
    N = int(np.prod(spatial))

    net_f = net_output.reshape(B, C, N)
    bound_f = bound.reshape(B, C, N)

    n128 = -(-N // 128) * 128
    if n128 != N:
        # TODO(synk): this lane-remainder pad (only when prod(spatial) % 128 != 0)
        # still materializes one HBM copy; a fully pad-free path needs an
        # in-kernel lane mask on the flat layout.  Zero logits * zero bound
        # contribute exactly 0, so numerics are unchanged.
        pad = ((0, 0), (0, 0), (0, n128 - N))
        net_f = jnp.pad(net_f, pad)
        bound_f = jnp.pad(bound_f, pad)
    R = n128 // 128

    # Free, contiguous lanes-last reshape: dense (rows, 128) slabs per channel.
    net_r = net_f.reshape(B, C, R, 128)
    bound_r = bound_f.reshape(B, C, R, 128)

    target_step_bytes, vmem_limit = _generation_params()
    bytes_per_row = C * 128 * (np.dtype(net_output.dtype).itemsize
                               + np.dtype(bound.dtype).itemsize)
    if tile_rows is None:
        tile_rows = _pick_tile_rows(R, bytes_per_row, target_step_bytes)
    else:
        assert tile_rows == R or tile_rows % 8 == 0
    num_tiles = -(-R // tile_rows)

    # v7x megacore: the batch axis is the natural parallel axis; when it cannot
    # feed two TensorCores, split the spatial-tile range in two.  Harmless
    # (size-1 axis or balanced split) on single-core v5e/v6e.
    num_splits = 2 if (B % 2 == 1 and num_tiles >= 2) else 1
    tiles_per_split = -(-num_tiles // num_splits)
    total_tiles = num_splits * tiles_per_split
    needs_mask = (total_tiles * tile_rows != R)

    if total_tiles == num_tiles:
        def in_idx(s, b, t):
            return (b, 0, s * tiles_per_split + t, 0)
    else:
        last = num_tiles - 1

        def in_idx(s, b, t):
            return (b, 0, jnp.minimum(s * tiles_per_split + t, last), 0)

    # TODO(synk): channel 0 of `bound` is still DMA'd (unused, 1/(2C) of HBM
    # traffic); skipping it cleanly needs an element-offset channel BlockSpec or
    # a producer-fused slice — a standalone wrapper-side slice is a net loss.
    partials = pl.pallas_call(
        _make_bd_loss_kernel(C, R, tile_rows, tiles_per_split, needs_mask),
        out_shape=jax.ShapeDtypeStruct((num_splits, B, tile_rows, 128),
                                       jnp.float32),
        grid_spec=pltpu.PrefetchScalarGridSpec(
            num_scalar_prefetch=0,
            grid=(num_splits, B, tiles_per_split),
            in_specs=[
                pl.BlockSpec((1, C, tile_rows, 128), in_idx),
                pl.BlockSpec((1, C, tile_rows, 128), in_idx),
            ],
            out_specs=pl.BlockSpec((1, 1, tile_rows, 128),
                                   lambda s, b, t: (s, b, 0, 0)),
        ),
        compiler_params=pltpu.CompilerParams(
            # split & batch axes are independent (own output blocks) -> parallel;
            # spatial-tile axis carries the resident accumulator -> arbitrary.
            dimension_semantics=("parallel", "parallel", "arbitrary"),
            vmem_limit_bytes=vmem_limit,
        ),
    )(net_r, bound_r)

    count = B * (C - 1) * N  # elements of multipled = (B, C-1, X, Y, Z)
    return (jnp.sum(partials) / count).astype(jnp.float32)


def _bd_loss_reference(net_output, target, bound):
    del target
    x = net_output.astype(jnp.float32)
    sm = jax.nn.softmax(x, axis=1)
    pc = sm[:, 1:, ...]
    dc = bound[:, 1:, ...].astype(jnp.float32)
    return jnp.mean(pc * dc)


if __name__ == "__main__":
    key = jax.random.PRNGKey(0)
    k1, k2, k3 = jax.random.split(key, 3)

    # (8, 12, 16) -> N = 1536 = 12 rows of 128 lanes; with tile_rows = 8 the
    # last spatial tile is partial, exercising the in-kernel row mask.
    B, C, X, Y, Z = 2, 4, 8, 12, 16
    net_output = jax.random.normal(k1, (B, C, X, Y, Z), dtype=jnp.float32)
    target = (jax.random.uniform(k2, (B, 1, X, Y, Z)) * C).astype(jnp.float32)
    bound = jax.random.normal(k3, (B, C, X, Y, Z), dtype=jnp.float32)

    loss = bd_loss(net_output, target, bound)
    loss = jax.block_until_ready(loss)

    ref = jax.block_until_ready(_bd_loss_reference(net_output, target, bound))
    if not np.allclose(np.asarray(loss), np.asarray(ref), rtol=1e-5, atol=1e-6):
        raise AssertionError(f"mismatch: pallas={loss} reference={ref}")

    print("KERNEL_OK")
</pallas_src>

<mosaic_0001>
module attributes {stable_mosaic.version = 11 : i64} {
  func.func @kernel(%arg0: i32, %arg1: i32, %arg2: i32, %arg3: memref<1x4x8x128xf32, #tpu.memory_space<vmem>>, %arg4: memref<1x4x8x128xf32, #tpu.memory_space<vmem>>, %arg5: memref<1x1x8x128xf32, #tpu.memory_space<vmem>>) attributes {dimension_semantics = [#tpu.dimension_semantics<parallel>, #tpu.dimension_semantics<parallel>, #tpu.dimension_semantics<arbitrary>], iteration_bounds = array<i64: 1, 2, 2>, scalar_prefetch = 0 : i64, scratch_operands = 0 : i64, tpu.core_type = #tpu.core_type<tc>, window_params = [{transform_indices = @transform_0, window_bounds = array<i64: 1, 4, 8, 128>}, {transform_indices = @transform_1, window_bounds = array<i64: 1, 4, 8, 128>}, {transform_indices = @transform_2, window_bounds = array<i64: 1, 1, 8, 128>}]} {
    %c0 = arith.constant 0 : index
    %c0_0 = arith.constant 0 : index
    %c0_1 = arith.constant 0 : index
    %c0_2 = arith.constant 0 : index
    %0 = vector.load %arg3[%c0, %c0_0, %c0_1, %c0_2] : memref<1x4x8x128xf32, #tpu.memory_space<vmem>>, vector<1x1x8x128xf32>
    %1 = vector.shape_cast %0 : vector<1x1x8x128xf32> to vector<8x128xf32>
    %c0_3 = arith.constant 0 : index
    %c1 = arith.constant 1 : index
    %c0_4 = arith.constant 0 : index
    %c0_5 = arith.constant 0 : index
    %2 = vector.load %arg3[%c0_3, %c1, %c0_4, %c0_5] : memref<1x4x8x128xf32, #tpu.memory_space<vmem>>, vector<1x1x8x128xf32>
    %3 = vector.shape_cast %2 : vector<1x1x8x128xf32> to vector<8x128xf32>
    %4 = arith.maximumf %1, %3 : vector<8x128xf32>
    %c0_6 = arith.constant 0 : index
    %c2 = arith.constant 2 : index
    %c0_7 = arith.constant 0 : index
    %c0_8 = arith.constant 0 : index
    %5 = vector.load %arg3[%c0_6, %c2, %c0_7, %c0_8] : memref<1x4x8x128xf32, #tpu.memory_space<vmem>>, vector<1x1x8x128xf32>
    %6 = vector.shape_cast %5 : vector<1x1x8x128xf32> to vector<8x128xf32>
    %7 = arith.maximumf %4, %6 : vector<8x128xf32>
    %c0_9 = arith.constant 0 : index
    %c3 = arith.constant 3 : index
    %c0_10 = arith.constant 0 : index
    %c0_11 = arith.constant 0 : index
    %8 = vector.load %arg3[%c0_9, %c3, %c0_10, %c0_11] : memref<1x4x8x128xf32, #tpu.memory_space<vmem>>, vector<1x1x8x128xf32>
    %9 = vector.shape_cast %8 : vector<1x1x8x128xf32> to vector<8x128xf32>
    %10 = arith.maximumf %7, %9 : vector<8x128xf32>
    %c0_12 = arith.constant 0 : index
    %c0_13 = arith.constant 0 : index
    %c0_14 = arith.constant 0 : index
    %c0_15 = arith.constant 0 : index
    %11 = vector.load %arg3[%c0_12, %c0_13, %c0_14, %c0_15] : memref<1x4x8x128xf32, #tpu.memory_space<vmem>>, vector<1x1x8x128xf32>
    %12 = vector.shape_cast %11 : vector<1x1x8x128xf32> to vector<8x128xf32>
    %13 = arith.subf %12, %10 : vector<8x128xf32>
    %14 = math.exp %13 : vector<8x128xf32>
    %cst = arith.constant 0.000000e+00 : f32
    %15 = vector.broadcast %cst : f32 to vector<8x128xf32>
    %c0_16 = arith.constant 0 : index
    %c1_17 = arith.constant 1 : index
    %c0_18 = arith.constant 0 : index
    %c0_19 = arith.constant 0 : index
    %16 = vector.load %arg3[%c0_16, %c1_17, %c0_18, %c0_19] : memref<1x4x8x128xf32, #tpu.memory_space<vmem>>, vector<1x1x8x128xf32>
    %17 = vector.shape_cast %16 : vector<1x1x8x128xf32> to vector<8x128xf32>
    %18 = arith.subf %17, %10 : vector<8x128xf32>
    %19 = math.exp %18 : vector<8x128xf32>
    %20 = arith.addf %14, %19 : vector<8x128xf32>
    %c0_20 = arith.constant 0 : index
    %c1_21 = arith.constant 1 : index
    %c0_22 = arith.constant 0 : index
    %c0_23 = arith.constant 0 : index
    %21 = vector.load %arg4[%c0_20, %c1_21, %c0_22, %c0_23] : memref<1x4x8x128xf32, #tpu.memory_space<vmem>>, vector<1x1x8x128xf32>
    %22 = vector.shape_cast %21 : vector<1x1x8x128xf32> to vector<8x128xf32>
    %23 = arith.mulf %19, %22 : vector<8x128xf32>
    %24 = arith.addf %15, %23 : vector<8x128xf32>
    %c0_24 = arith.constant 0 : index
    %c2_25 = arith.constant 2 : index
    %c0_26 = arith.constant 0 : index
    %c0_27 = arith.constant 0 : index
    %25 = vector.load %arg3[%c0_24, %c2_25, %c0_26, %c0_27] : memref<1x4x8x128xf32, #tpu.memory_space<vmem>>, vector<1x1x8x128xf32>
    %26 = vector.shape_cast %25 : vector<1x1x8x128xf32> to vector<8x128xf32>
    %27 = arith.subf %26, %10 : vector<8x128xf32>
    %28 = math.exp %27 : vector<8x128xf32>
    %29 = arith.addf %20, %28 : vector<8x128xf32>
    %c0_28 = arith.constant 0 : index
    %c2_29 = arith.constant 2 : index
    %c0_30 = arith.constant 0 : index
    %c0_31 = arith.constant 0 : index
    %30 = vector.load %arg4[%c0_28, %c2_29, %c0_30, %c0_31] : memref<1x4x8x128xf32, #tpu.memory_space<vmem>>, vector<1x1x8x128xf32>
    %31 = vector.shape_cast %30 : vector<1x1x8x128xf32> to vector<8x128xf32>
    %32 = arith.mulf %28, %31 : vector<8x128xf32>
    %33 = arith.addf %24, %32 : vector<8x128xf32>
    %c0_32 = arith.constant 0 : index
    %c3_33 = arith.constant 3 : index
    %c0_34 = arith.constant 0 : index
    %c0_35 = arith.constant 0 : index
    %34 = vector.load %arg3[%c0_32, %c3_33, %c0_34, %c0_35] : memref<1x4x8x128xf32, #tpu.memory_space<vmem>>, vector<1x1x8x128xf32>
    %35 = vector.shape_cast %34 : vector<1x1x8x128xf32> to vector<8x128xf32>
    %36 = arith.subf %35, %10 : vector<8x128xf32>
    %37 = math.exp %36 : vector<8x128xf32>
    %38 = arith.addf %29, %37 : vector<8x128xf32>
    %c0_36 = arith.constant 0 : index
    %c3_37 = arith.constant 3 : index
    %c0_38 = arith.constant 0 : index
    %c0_39 = arith.constant 0 : index
    %39 = vector.load %arg4[%c0_36, %c3_37, %c0_38, %c0_39] : memref<1x4x8x128xf32, #tpu.memory_space<vmem>>, vector<1x1x8x128xf32>
    %40 = vector.shape_cast %39 : vector<1x1x8x128xf32> to vector<8x128xf32>
    %41 = arith.mulf %37, %40 : vector<8x128xf32>
    %42 = arith.addf %33, %41 : vector<8x128xf32>
    %43 = tpu.reciprocal %38 : vector<8x128xf32> -> vector<8x128xf32>
    %44 = arith.mulf %42, %43 : vector<8x128xf32>
    %c2_i32 = arith.constant 2 : i32
    %45 = arith.muli %arg0, %c2_i32 : i32
    %46 = arith.addi %45, %arg2 : i32
    %47 = tpu.iota {dimensions = array<i32: 0>} : vector<8x128xi32>
    %c8_i32 = arith.constant 8 : i32
    %48 = arith.muli %46, %c8_i32 : i32
    %49 = vector.broadcast %48 : i32 to vector<8x128xi32>
    %50 = arith.addi %49, %47 : vector<8x128xi32>
    %c12_i32 = arith.constant 12 : i32
    %51 = vector.broadcast %c12_i32 : i32 to vector<8x128xi32>
    %52 = arith.cmpi slt, %50, %51 : vector<8x128xi32>
    %cst_40 = arith.constant 0.000000e+00 : f32
    %53 = vector.broadcast %cst_40 : f32 to vector<8x128xf32>
    %54 = arith.select %52, %44, %53 : vector<8x128xi1>, vector<8x128xf32>
    %c0_i32 = arith.constant 0 : i32
    %55 = arith.cmpi eq, %arg2, %c0_i32 : i32
    %56 = arith.extui %55 : i1 to i32
    %c0_i32_41 = arith.constant 0 : i32
    %57 = arith.cmpi ne, %56, %c0_i32_41 : i32
    scf.if %57 {
      %cst_50 = arith.constant 0.000000e+00 : f32
      %62 = vector.broadcast %cst_50 : f32 to vector<1x1x8x128xf32>
      %c0_51 = arith.constant 0 : index
      %c0_52 = arith.constant 0 : index
      %c0_53 = arith.constant 0 : index
      %c0_54 = arith.constant 0 : index
      %63 = vector.load %arg5[%c0_51, %c0_52, %c0_53, %c0_54] : memref<1x1x8x128xf32, #tpu.memory_space<vmem>>, vector<1x1x8x128xf32>
      tpu.vector_store %arg5[%c0_51, %c0_52, %c0_53, %c0_54], %62 {strides = array<i32>} : memref<1x1x8x128xf32, #tpu.memory_space<vmem>>, vector<1x1x8x128xf32>,
    } else {
    }
    %c0_42 = arith.constant 0 : index
    %c0_43 = arith.constant 0 : index
    %c0_44 = arith.constant 0 : index
    %c0_45 = arith.constant 0 : index
    %58 = vector.load %arg5[%c0_42, %c0_43, %c0_44, %c0_45] : memref<1x1x8x128xf32, #tpu.memory_space<vmem>>, vector<1x1x8x128xf32>
    %59 = vector.shape_cast %54 : vector<8x128xf32> to vector<1x1x8x128xf32>
    %60 = arith.addf %58, %59 : vector<1x1x8x128xf32>
    %c0_46 = arith.constant 0 : index
    %c0_47 = arith.constant 0 : index
    %c0_48 = arith.constant 0 : index
    %c0_49 = arith.constant 0 : index
    %61 = vector.load %arg5[%c0_46, %c0_47, %c0_48, %c0_49] : memref<1x1x8x128xf32, #tpu.memory_space<vmem>>, vector<1x1x8x128xf32>
    tpu.vector_store %arg5[%c0_46, %c0_47, %c0_48, %c0_49], %60 {strides = array<i32>} : memref<1x1x8x128xf32, #tpu.memory_space<vmem>>, vector<1x1x8x128xf32>,
    return
  }
  func.func @transform_0(%arg0: i32, %arg1: i32, %arg2: i32) -> (i32, i32, i32, i32) {
    %c2_i32 = arith.constant 2 : i32
    %0 = arith.muli %arg0, %c2_i32 : i32
    %1 = arith.addi %0, %arg2 : i32
    %c0_i32 = arith.constant 0 : i32
    %c0_i32_0 = arith.constant 0 : i32
    %c0_i32_1 = arith.constant 0 : i32
    return %arg1, %c0_i32, %1, %c0_i32_0 : i32, i32, i32, i32
  }
  func.func @transform_1(%arg0: i32, %arg1: i32, %arg2: i32) -> (i32, i32, i32, i32) {
    %c2_i32 = arith.constant 2 : i32
    %0 = arith.muli %arg0, %c2_i32 : i32
    %1 = arith.addi %0, %arg2 : i32
    %c0_i32 = arith.constant 0 : i32
    %c0_i32_0 = arith.constant 0 : i32
    %c0_i32_1 = arith.constant 0 : i32
    return %arg1, %c0_i32, %1, %c0_i32_0 : i32, i32, i32, i32
  }
  func.func @transform_2(%arg0: i32, %arg1: i32, %arg2: i32) -> (i32, i32, i32, i32) {
    %c0_i32 = arith.constant 0 : i32
    %c0_i32_0 = arith.constant 0 : i32
    %c0_i32_1 = arith.constant 0 : i32
    return %arg0, %arg1, %c0_i32, %c0_i32_0 : i32, i32, i32, i32
  }
}

</mosaic_0001>

<bundles_post_ra>
// kernel: tpu_custom_call.1
= control target key start
LH: loop header
LB: loop body
LE: loop exit
PB: predicated region body
PF: predicated region fallthrough
CT: control target
= control target key end

     0   :  { %7 = vsyncpa [#allocation5], 0  ;;  %s915_s0 = inlined_call_operand.vmem [shape: f32[2,4,12,128], index: 0, kind: input, shape index: {}]   ;;  %s916_s1 = inlined_call_operand.vmem [shape: f32[2,4,12,128], index: 1, kind: input, shape index: {}]   ;;  %s917_s2 = inlined_call_operand.hbm [shape: f32[1,2,8,128], index: 2, kind: output, shape index: {}]  }
   0x1   :  { %9 = vsyncpa [#allocation5 + $0x1], 0  ;;  %s747_s9 = smov 0   ;;  %s749_s10 = smov 0  }
   0x2   :  { %s751_s11 = smov 0   ;;  %s753_s12 = smov 0  }
   0x3   :  { %s755_s13 = smov 0   ;;  %s757_s14 = smov 0  }
   0x4   :  { %s759_s15 = smov 0   ;;  %s761_s16 = smov 0  }
   0x5   :  { %s763_s17 = smov 0   ;;  %s765_s18 = smov 0  }
   0x6 LB: > { %s495_s19 = sadd.s32 4294967295, %s729_s18   ;;  %s496_s20 = sadd.s32 4294967294, %s729_s18   ;;  %s729_s18 = sphi %s765_s18, %s15_s18   ;;  %s725_s17 = sphi %s763_s17, %s929_s17   ;;  %s721_s16 = sphi %s761_s16, %s928_s16   ;;  %s717_s15 = sphi %s759_s15, %s927_s15   ;;  %s713_s14 = sphi %s757_s14, %s926_s14   ;;  %s709_s13 = sphi %s755_s13, %s925_s13   ;;  %s705_s12 = sphi %s753_s12, %s924_s12   ;;  %s701_s11 = sphi %s751_s11, %s923_s11   ;;  %s697_s10 = sphi %s749_s10, %s922_s10   ;;  %s693_s9 = sphi %s747_s9, %s921_s9  }
   0x7   : > { %s27_s21 = sadd.s32 1, %s721_s16  ;;  %s30_s22 = sadd.s32 1, %s725_s17 }
   0x8   : > { %p28_p0 = scmp.ge.s32.totalorder %s27_s21, 2  ;;  %s47_s23 = sadd.s32 1, %s709_s13 }
   0x9   : > { %p54_p1 = scmp.ne.s32.totalorder %s709_s13, %s705_s12  ;;  %p55_p2 = scmp.eq.s32.totalorder %s729_s18, 0 }
   0xa   : > { %s931_s21 = smov (%p28_p0, %s27_s21), 0  ;;  %s933_s22 = smov (!%p28_p0, %s30_s22), %s725_s17 }
   0xb   : > { %s43_s24 = ssub.s32 %s721_s16, %s931_s21  ;;  %p810_p3 = por %p55_p2, %p54_p1 }
   0xc   : > { %p32_p4 = scmp.ge.s32.totalorder %s933_s22, 2  ;;  %s107_s26 = sadd.s32 1, %s701_s11 }
   0xd   : > { %p117_p5 = scmp.ne.s32.totalorder %s701_s11, %s697_s10  ;;  %p118_p6 = scmp.eq.s32.totalorder %s495_s19, 3 }
   0xe   : > { %s935_s22 = smov (%p32_p4, %s933_s22), 0  ;;  %p123_p8 = scmp.ne.s32.totalorder %s697_s10, %s693_s9 }
   0xf   : > { %p819_p7 = por %p118_p6, %p117_p5  ;;  %s42_s28 = ssub.s32 %s725_s17, %s935_s22 }
  0x10   : > { %p124_p9 = scmp.eq.s32.totalorder %s496_s20, 3  ;;  %s44_s29 = sor.u32 %s43_s24, %s42_s28 }
  0x11   : > { %p105_p10 = scmp.eq.s32.totalorder %s42_s28, 0  ;;  %p45_p11 = scmp.eq.s32.totalorder %s44_s29, 0 }
  0x12   : > { %p827_p12 = por %p124_p9, %p123_p8  ;;  %p498_p13 = scmp.ge.s32.totalorder %s729_s18, 4 }
  0x13   : > { %s832_s3 = scalar_select %p105_p10, %s701_s11, %s107_s26  }
  0x14   : > { %s835_s4 = scalar_select %p45_p11, %s709_s13, %s47_s23  }
  0x15   : > { %140 = sbr.rel (%p498_p13) target bundleno = 46 (0x2e), region = 16 }
  0x1a   : > { %143 = sbr.rel (!%p810_p3) target bundleno = 36 (0x24), region = 20  ;;  %s145_s5 = sand.u32 (%p810_p3), 1, %s709_s13  }
  0x1b   : > { %s500_s6 = sshll.u32 (%p810_p3), %s725_s17, 3  ;;  %s499_s7 = sshll.u32 (%p810_p3), %s145_s5, 5 }
  0x1c   : > { %s151_s8 = sadd.s32 (%p810_p3), %s721_s16, %s500_s6  ;;  %s147_s23 = scalar_lea.vmem (%p810_p3), [#allocation2], %s499_s7 }
  0x1d   : > { %s501_s19 = sshll.u32 (%p810_p3), %s151_s8, 3 }
  0x1e   : > { %s153_s26 = scalar_lea.vmem (%p810_p3), %s915_s0, %s501_s19 }
  0x1f   : > { %v188_v0 = vld [vmem:[%s153_s26] sm:$0xff]  ;;  %v190_v1 = vld [vmem:[%s153_s26 + $0x10] sm:$0xff] }
  0x20   : > { %v192_v2 = vld [vmem:[%s153_s26 + $0x20] sm:$0xff]  ;;  %189 = vst [vmem:[%s147_s23] sm:$0xff] %v188_v0  ;;  %v194_v3 = vld [vmem:[%s153_s26 + $0x30] sm:$0xff] }
  0x21   : > { %191 = vst [vmem:[%s147_s23 + $0x8] sm:$0xff] %v190_v1 }
  0x22   : > { %193 = vst [vmem:[%s147_s23 + $0x10] sm:$0xff] %v192_v2 }
  0x23   : > { %195 = vst [vmem:[%s147_s23 + $0x18] sm:$0xff] %v194_v3 }
  0x24 PF: > { %201 = sbr.rel (!%p810_p3) target bundleno = 46 (0x2e), region = 58  ;;  %s203_s28 = sand.u32 (%p810_p3), 1, %s709_s13  }
  0x25   : > { %s503_s29 = sshll.u32 (%p810_p3), %s725_s17, 3  ;;  %s502_s5 = sshll.u32 (%p810_p3), %s203_s28, 5 }
  0x26   : > { %s209_s6 = sadd.s32 (%p810_p3), %s721_s16, %s503_s29  ;;  %s205_s24 = scalar_lea.vmem (%p810_p3), [#allocation3], %s502_s5 }
  0x27   : > { %s504_s8 = sshll.u32 (%p810_p3), %s209_s6, 3 }
  0x28   : > { %s211_s7 = scalar_lea.vmem (%p810_p3), %s916_s1, %s504_s8 }
  0x29   : > { %v246_v4 = vld [vmem:[%s211_s7] sm:$0xff]  ;;  %v248_v5 = vld [vmem:[%s211_s7 + $0x10] sm:$0xff] }
  0x2a   : > { %v250_v6 = vld [vmem:[%s211_s7 + $0x20] sm:$0xff]  ;;  %247 = vst [vmem:[%s205_s24] sm:$0xff] %v246_v4  ;;  %v252_v7 = vld [vmem:[%s211_s7 + $0x30] sm:$0xff] }
  0x2b   : > { %249 = vst [vmem:[%s205_s24 + $0x8] sm:$0xff] %v248_v5 }
  0x2c   : > { %251 = vst [vmem:[%s205_s24 + $0x10] sm:$0xff] %v250_v6 }
  0x2d   : > { %253 = vst [vmem:[%s205_s24 + $0x18] sm:$0xff] %v252_v7 }
  0x2e PF: > { %p505_p0 = scmp.ge.s32.totalorder %s729_s18, 1  ;;  %p258_p1 = scmp.lt.s32.totalorder %s729_s18, 5 }
  0x30   : > { %p259_p2 = pnand %p505_p0, %p258_p1 }
  0x31   : > { %s265_s25 = sand.u32 (!%p259_p2), 1, %s705_s12   ;;  %s294_s26 = sand.u32 (!%p259_p2), 1, %s697_s10  }
  0x32   : > { %262 = sbr.rel (%p259_p2) target bundleno = 117 (0x75), region = 96  ;;  %s506_s23 = sshll.u32 (!%p259_p2), %s265_s25, 5 }
  0x33   : > { %s860_s28 = sshll.u32 (!%p259_p2), %s294_s26, 3  ;;  %s267_s29 = scalar_lea.vmem (!%p259_p2), [#allocation2], %s506_s23 }
  0x34   : > { %s274_s12 = scalar_lea.vmem (!%p259_p2), [#allocation3], %s506_s23  ;;  %s515_s5 = sshll.u32 (!%p259_p2), %s713_s14, 3 }
  0x35   : > { %s296_s6 = scalar_lea.vmem (!%p259_p2), [#allocation4], %s860_s28  ;;  %p516_p3 = scmp.ne.s32.totalorder (!%p259_p2), %s713_s14, 0 }
  0x37   : > { %v301_v8 = vld [vmem:[%s267_s29] sm:$0xff]  ;;  %v509_v9 = vld [vmem:[%s267_s29 + $0x8] sm:$0xff]  ;;  %v510_v10 = vld [vmem:[%s267_s29 + $0x10] sm:$0xff]  ;;  %v355_v32 = vlaneseq  ;;  %v358_v42 = vstv %s515_s5 }
  0x38   : > { %v304_v11 = vmax.f32 %v301_v8, %v509_v9  ;;  %v511_v12 = vld [vmem:[%s267_s29 + $0x18] sm:$0xff]  ;;  %v512_v30 = vld [vmem:[%s274_s12 + $0x8] sm:$0xff]  ;;  %v513_v31 = vld [vmem:[%s274_s12 + $0x10] sm:$0xff] }
  0x39   : > { %v514_v35 = vld [vmem:[%s274_s12 + $0x18] sm:$0xff]  ;;  %v356_v38 = vshrl.u32 %v355_v32, 7 }
  0x3a   : > { %v307_v13 = vmax.f32 %v304_v11, %v510_v10 }
  0x3b   : > { %v359_v47 = vadd.s32 %v358_v42, %v356_v38 }
  0x3c   : > { %v310_v14 = vmax.f32 %v307_v13, %v511_v12 }
  0x3d   : > { %vm360_vm4 = vcmp.lt.s32.totalorder %v359_v47, 12 }
  0x3e   : > { %v311_v15 = vsub.f32 %v301_v8, %v310_v14  ;;  %v314_v16 = vsub.f32 %v509_v9, %v310_v14  ;;  %v322_v17 = vsub.f32 %v510_v10, %v310_v14  ;;  %v330_v18 = vsub.f32 %v511_v12, %v310_v14 }
  0x40   : > { %v312_v19 = vmul.f32 1.442695, %v311_v15  ;;  %v315_v20 = vmul.f32 1.442695, %v314_v16  ;;  %v323_v21 = vmul.f32 1.442695, %v322_v17 }
  0x41   : > { %v331_v22 = vmul.f32 1.442695, %v330_v18 }
  0x42   : > { %609 = vpow2.f32 %v312_v19 }
  0x43   : > { %611 = vpow2.f32 %v315_v20 }
  0x44   : > { %613 = vpow2.f32 %v323_v21 }
  0x45   : > { %615 = vpow2.f32 %v331_v22 }
  0x48   : > { %v610_v23 = vpop.eup %609 }
  0x49   : > { %v612_v24 = vpop.eup %611 }
  0x4a   : > { %v614_v25 = vpop.eup %613  ;;  %v317_v26 = vadd.f32 %v612_v24, %v610_v23  ;;  %v320_v33 = vmul.f32 %v612_v24, %v512_v30 }
  0x4b   : > { %v616_v27 = vpop.eup %615  ;;  %v328_v34 = vmul.f32 %v614_v25, %v513_v31 }
  0x4c   : > { %v325_v28 = vadd.f32 %v614_v25, %v317_v26  ;;  %v336_v40 = vmul.f32 %v616_v27, %v514_v35 }
  0x4d   : > { %v329_v39 = vadd.f32 %v328_v34, %v320_v33 }
  0x4e   : > { %v333_v29 = vadd.f32 %v616_v27, %v325_v28 }
  0x4f   : > { %v337_v48 = vadd.f32 %v336_v40, %v329_v39 }
  0x50   : > { %617 = vrcp.f32 %v333_v29  ;;  %v349_v41 = vand.u32 2147483648, %v333_v29  ;;  %vm343_vm0 = vweird.f32 %v333_v29  ;;  %v347_v44 = vand.u32 2147483647, %v333_v29 }
  0x52   : > { %v350_v46 = vor.u32 1.1754944e-38, %v349_v41  ;;  %vm348_vm3 = vcmp.eq.f32.partialorder %v347_v44, 8.507059e+37 }
  0x56   : > { %v618_v36 = vpop.eup %617 }
  0x57   : > { %v339_v37 = vmul.f32 %v618_v36, %v333_v29  ;;  %vm344_vm1 = vweird.f32 %v618_v36 }
  0x58   : > { %vm345_vm2 = vmor %vm343_vm0, %vm344_vm1 }
  0x59   : > { %v340_v43 = vsub.f32 1.0, %v339_v37 }
  0x5b   : > { %v341_v45 = vmul.f32 %v618_v36, %v340_v43 }
  0x5d   : > { %v342_v49 = vadd.f32 %v618_v36, %v341_v45 }
  0x5f   : > { %v346_v50 = vsel %vm345_vm2, %v618_v36, %v342_v49  ;;  %365 = sbr.rel (%p516_p3) target bundleno = 102 (0x66), region = 108 }
  0x60   : > { %v351_v51 = vsel %vm348_vm3, %v350_v46, %v346_v50 }
  0x61   : > { %v352_v52 = vmul.f32 %v351_v51, %v337_v48 }
  0x63   : > { %v361_v53 = vsel %vm360_vm4, %v352_v52, 0.0 }
  0x64   : > { %v731_v54 = vmov 0.0  }
  0x65   : > { %366 = vst [vmem:[%s296_s6] sm:$0xff] %v731_v54 }
  0x66 PF: > { %s518_s8 = sshll.u32 %s717_s15, 3  ;;  %s385_s24 = sshll.u32 %s296_s6, 4  ;;  %s386_s24 = int_to_ptr.vmem [resolvable:$true] %s385_s24 }
  0x67   : > { %s383_s7 = scalar_lea.hbm %s917_s2, %s518_s8  ;;  %s371_s14 = scalar_lea.sflag [#allocation5], %s294_s26 }
  0x68   : > { %s387_s25 = sshll.u32 %s383_s7, 4  ;;  %s639_s12 = scalar_lea.hbm %s917_s2, 16  ;;  %s388_s25 = int_to_ptr.hbm [resolvable:$true] %s387_s25 }
  0x69   : > { %s633_s23 = sshra.s32 %s388_s25, 4  ;;  %s634_s23 = int_to_ptr.hbm [resolvable:$true] %s633_s23 }
  0x6a   : > { %s635_s28 = scalar_lea.hbm %s634_s23, 8  ;;  %p640_p8 = scmp.lt.s32.totalorder %s634_s23, %s917_s2 }
  0x6b   : > { %p636_p4 = scmp.ne.s32.totalorder %s634_s23, %s635_s28  ;;  %p641_p9 = scmp.lt.s32.totalorder %s639_s12, %s635_s28 }
  0x6c   : > { %v367_v55 = vld [vmem:[%s296_s6] sm:$0xff] }
  0x6d   : > { %v368_v56 = vadd.f32 %v367_v55, %v361_v53  ;;  %p637_p5 = pnand %p636_p4, %p819_p7  ;;  %p642_p10 = por %p641_p9, %p640_p8 }
  0x6f   : > { %369 = vst [vmem:[%s296_s6] sm:$0xff] %v368_v56  ;;  %p638_p6 = pneg %p637_p5 }
  0x71   : > { %p643_p11 = pnand %p642_p10, %p638_p6 }
  0x73   : > { %646 = shalt.err (!%p643_p11)
}
  0x74   : > { %521 = dma.vmem_to_hbm [thread:$0]  (%p819_p7), %s386_s24, 128, %s388_s25, %s371_s14  }
  0x75 PF: > { %p527_p13 = scmp.ge.s32.totalorder %s729_s18, 2  ;;  %s399_s26 = sand.u32 1, %s693_s9  }
  0x76   : > { %s400_s6 = scalar_lea.sflag [#allocation5], %s399_s26 }
  0x77   : > { %p524_p0 = pnand %p527_p13, %p827_p12 }
  0x79   : > { %p525_p1 = pneg %p524_p0 }
  0x7b   : > { %688 = dma.done.wait (%p525_p1), %s400_s6, 128  }
  0x7c   : > { %690 = vsyncadd (%p525_p1), %s400_s6, 4294967168  ;;  %s15_s18 = sadd.s32 1, %s729_s18   ;;  %s921_s9 = smov %s697_s10 }
  0x7d   : > { %p12_p2 = scmp.ge.s32.totalorder %s15_s18, 6   ;;  %s922_s10 = smov %s701_s11 }
  0x7e   : > { %s923_s11 = smov %s832_s3  ;;  %s924_s12 = smov %s709_s13 }
  0x7f   : > { %s925_s13 = smov %s835_s4  ;;  %s926_s14 = smov %s721_s16 }
  0x80   : > { %s927_s15 = smov %s725_s17  ;;  %s928_s16 = smov %s931_s21 }
  0x81   : > { %s929_s17 = smov %s935_s22  ;;  %14 = sbr.rel (!%p12_p2) target bundleno = 6 (0x6), region = 162 }
  0x86   :  { %406 = vsyncpa [#allocation5], 1 }
  0x87   :  { %408 = vsyncpa [#allocation5 + $0x1], 1 }

</bundles_post_ra>
